<compile_context>
chip_gen: v5e
topology: v5e:2x2
jax: 0.10.0
libtpu: 0.0.40
codegen_flags: <defaults>
</compile_context>

<pallas_src>
import functools

import jax
import jax.numpy as jnp
from jax.experimental import pallas as pl
from jax.experimental.pallas import tpu as pltpu

# ----------------------------- problem sizes ------------------------------
B = 2          # batch
F = 7          # feature_fields
E = 32         # embed_size
H = 4          # head_num
S = F + 1      # attention sequence length (fields + appended y token)
D = E // H     # head dim


# ------------------------------- kernel -----------------------------------
def _mha_interact_kernel(xin_ref, wpack_ref, out_ref, *, num_heads):
    """Per-batch multi-head self-attention + sequence-sum.

    xin_ref  : (1, S, E)  bf16  one batch row's token sequence [x ; y]
    wpack_ref: (E+1, 4E)  bf16  packed parameters:
               rows 0..E-1 : [ Wq.T/sqrt(D) | Wk.T | Wv.T | Wo.T ]
               row  E      : [ bq /sqrt(D)  | bk   | bv   | S*bo ]
    out_ref  : (1, 1, E)  f32   sum over the sequence of attn_output
    """
    seq = xin_ref.shape[1]
    emb = xin_ref.shape[2]
    hd = emb // num_heads

    x = xin_ref[0]                                    # (S, E)   bf16
    wpk = wpack_ref[...]                              # (E+1, 4E) bf16
    w_qkv = wpk[:emb, :3 * emb]                       # (E, 3E)
    wo_t = wpk[:emb, 3 * emb:]                        # (E, E)
    b_qkv = wpk[emb:emb + 1, :3 * emb].astype(jnp.float32)   # (1, 3E)
    bo_s = wpk[emb:emb + 1, 3 * emb:].astype(jnp.float32)    # (1, E), already *S

    # Fused QKV projection: bf16 MXU inputs, f32 accumulation.
    qkv = jnp.dot(x, w_qkv, preferred_element_type=jnp.float32) + b_qkv

    ctx_parts = []
    for h in range(num_heads):        # static unroll; H is small
        lo = h * hd
        q_h = qkv[:, lo:lo + hd].astype(jnp.bfloat16)                  # (S, D)
        k_h = qkv[:, emb + lo:emb + lo + hd].astype(jnp.bfloat16)      # (S, D)
        v_h = qkv[:, 2 * emb + lo:2 * emb + lo + hd].astype(jnp.bfloat16)

        # Scores: contract over the head dim directly (no in-kernel .T).
        scores = jax.lax.dot_general(
            q_h, k_h, (((1,), (1,)), ((), ())),
            preferred_element_type=jnp.float32)                        # (S, S)
        # Every row is fully populated (no mask) -> max-subtraction is safe.
        scores = scores - jnp.max(scores, axis=-1, keepdims=True)
        p = jnp.exp(scores)
        inv = pl.reciprocal(jnp.sum(p, axis=-1, keepdims=True), approx=True)
        p = p * inv
        # Commute the seq-sum ahead of p @ v:  colsum(p) @ v  ->  (1, D)
        p_colsum = jnp.sum(p, axis=0, keepdims=True).astype(jnp.bfloat16)
        ctx_parts.append(jnp.dot(p_colsum, v_h,
                                 preferred_element_type=jnp.float32))

    # Fused output projection: one (1,E)@(E,E) dot for all heads, + S*bo.
    ctx_sum = jnp.concatenate(ctx_parts, axis=-1).astype(jnp.bfloat16)  # (1, E)
    out = jnp.dot(ctx_sum, wo_t, preferred_element_type=jnp.float32) + bo_s
    out_ref[0] = out.astype(out_ref.dtype)


# ------------------------------ wrapper ------------------------------------
@jax.jit
def mha_interact(x, y, in_proj_w, in_proj_b, out_proj_w, out_proj_b):
    """x: (B, F, E) f32, y: (B, E) f32 -> (B, 2E) f32."""
    bsz, ff, emb = x.shape
    seq = ff + 1
    hd = emb // H
    scale = 1.0 / jnp.sqrt(jnp.float32(hd))

    # Token sequence [x ; y] per batch row; y itself is NOT a kernel input
    # (pure pass-through — concatenated back in the wrapper below).
    xin = jnp.concatenate([x, y[:, None, :]], axis=1).astype(jnp.bfloat16)

    # Pack all parameters into ONE buffer (one DMA instead of four), with:
    #   * PyTorch convention q = x @ Wq.T + bq  -> transposed layout,
    #   * 1/sqrt(D) folded into the Q projection (weights + bias),
    #   * output bias pre-scaled by S (seq-sum commuted through the bias).
    w_top = jnp.concatenate(
        [(in_proj_w[:emb] * scale).T,          # Wq.T / sqrt(D)   (E, E)
         in_proj_w[emb:2 * emb].T,             # Wk.T             (E, E)
         in_proj_w[2 * emb:].T,                # Wv.T             (E, E)
         out_proj_w.T],                        # Wo.T             (E, E)
        axis=1)                                                   # (E, 4E)
    b_row = jnp.concatenate(
        [in_proj_b[:emb] * scale, in_proj_b[emb:], out_proj_b * seq]
    ).reshape(1, 4 * emb)                                         # (1, 4E)
    wpack = jnp.concatenate([w_top, b_row], axis=0).astype(jnp.bfloat16)

    kernel = functools.partial(_mha_interact_kernel, num_heads=H)
    attn_sum = pl.pallas_call(
        kernel,
        out_shape=jax.ShapeDtypeStruct((bsz, 1, emb), jnp.float32),
        grid=(bsz,),
        in_specs=[
            pl.BlockSpec((1, seq, emb), lambda b: (b, 0, 0)),     # per-batch tokens
            pl.BlockSpec((emb + 1, 4 * emb), lambda b: (0, 0)),   # packed params
        ],
        out_specs=pl.BlockSpec((1, 1, emb), lambda b: (b, 0, 0)),
        compiler_params=pltpu.CompilerParams(
            dimension_semantics=("parallel",)),   # shards across TCs on v7x
    )(xin, wpack)

    # [attention seq-sum | y] concat done in the wrapper (fuses into XLA).
    return jnp.concatenate([attn_sum[:, 0, :], y], axis=-1)


# -------------------------- pure-JAX reference ------------------------------
def mha_interact_ref(x, y, in_proj_w, in_proj_b, out_proj_w, out_proj_b):
    xin = jnp.concatenate([x, y[:, None, :]], axis=1)              # (B, S, E)
    wq, wk, wv = in_proj_w[:E], in_proj_w[E:2 * E], in_proj_w[2 * E:]
    bq, bk, bv = in_proj_b[:E], in_proj_b[E:2 * E], in_proj_b[2 * E:]

    q = xin @ wq.T + bq
    k = xin @ wk.T + bk
    v = xin @ wv.T + bv
    q = q.reshape(B, S, H, D).transpose(0, 2, 1, 3) / jnp.sqrt(jnp.float32(D))
    k = k.reshape(B, S, H, D).transpose(0, 2, 1, 3)
    v = v.reshape(B, S, H, D).transpose(0, 2, 1, 3)
    scores = jnp.einsum("bhqd,bhkd->bhqk", q, k)
    p = jax.nn.softmax(scores, axis=-1)
    ctx = jnp.einsum("bhqk,bhkd->bhqd", p, v)
    ctx = ctx.transpose(0, 2, 1, 3).reshape(B, S, E)
    attn_out = ctx @ out_proj_w.T + out_proj_b
    summed = jnp.sum(attn_out, axis=1)
    return jnp.concatenate([summed, y], axis=-1)


# -------------------------------- main --------------------------------------
if __name__ == "__main__":
    key = jax.random.PRNGKey(0)
    kx, ky, kw, kb, kow, kob = jax.random.split(key, 6)

    # deterministic synthetic parameters (nn.MultiheadAttention shapes)
    in_proj_w = jax.random.normal(kw, (3 * E, E), jnp.float32) * 0.1
    in_proj_b = jax.random.normal(kb, (3 * E,), jnp.float32) * 0.1
    out_proj_w = jax.random.normal(kow, (E, E), jnp.float32) * 0.1
    out_proj_b = jax.random.normal(kob, (E,), jnp.float32) * 0.1

    x = jax.random.normal(kx, (B, F, E), jnp.float32)
    y = jax.random.normal(ky, (B, E), jnp.float32)

    out = mha_interact(x, y, in_proj_w, in_proj_b, out_proj_w, out_proj_b)
    out = jax.block_until_ready(out)

    ref = mha_interact_ref(x, y, in_proj_w, in_proj_b, out_proj_w, out_proj_b)
    assert out.shape == (B, 2 * E)
    # Tolerance reflects bf16 MXU operands (per performance review) plus the
    # EUP approximate reciprocal in the softmax; reference is pure f32.
    assert jnp.allclose(out, ref, rtol=2e-2, atol=2e-2), "mismatch vs reference"

    print("KERNEL_OK")
</pallas_src>

<mosaic_0001>
module attributes {stable_mosaic.version = 11 : i64} {
  func.func @_mha_interact_kernel(%arg0: i32, %arg1: memref<1x8x32xbf16, #tpu.memory_space<vmem>>, %arg2: memref<33x128xbf16, #tpu.memory_space<vmem>>, %arg3: memref<1x1x32xf32, #tpu.memory_space<vmem>>) attributes {dimension_semantics = [#tpu.dimension_semantics<parallel>], iteration_bounds = array<i64: 2>, scalar_prefetch = 0 : i64, scratch_operands = 0 : i64, tpu.core_type = #tpu.core_type<tc>, window_params = [{transform_indices = @transform_0, window_bounds = array<i64: 1, 8, 32>}, {pipeline_mode = #tpu.pipeline_mode<synchronous>, transform_indices = @transform_1, window_bounds = array<i64: 33, 128>}, {transform_indices = @transform_2, window_bounds = array<i64: 1, 1, 32>}]} {
    %c0 = arith.constant 0 : index
    %c0_0 = arith.constant 0 : index
    %c0_1 = arith.constant 0 : index
    %0 = vector.load %arg1[%c0, %c0_0, %c0_1] : memref<1x8x32xbf16, #tpu.memory_space<vmem>>, vector<1x8x32xbf16>
    %1 = vector.shape_cast %0 : vector<1x8x32xbf16> to vector<8x32xbf16>
    %c0_2 = arith.constant 0 : index
    %c0_3 = arith.constant 0 : index
    %2 = vector.load %arg2[%c0_2, %c0_3] : memref<33x128xbf16, #tpu.memory_space<vmem>>, vector<33x128xbf16>
    %3 = vector.extract_strided_slice %2 {offsets = [0, 0], sizes = [32, 96], strides = [1, 1]} : vector<33x128xbf16> to vector<32x96xbf16>
    %4 = vector.extract_strided_slice %2 {offsets = [0, 96], sizes = [32, 32], strides = [1, 1]} : vector<33x128xbf16> to vector<32x32xbf16>
    %5 = vector.extract_strided_slice %2 {offsets = [32, 0], sizes = [1, 96], strides = [1, 1]} : vector<33x128xbf16> to vector<1x96xbf16>
    %6 = arith.extf %5 : vector<1x96xbf16> to vector<1x96xf32>
    %7 = vector.extract_strided_slice %2 {offsets = [32, 96], sizes = [1, 32], strides = [1, 1]} : vector<33x128xbf16> to vector<1x32xbf16>
    %8 = arith.extf %7 : vector<1x32xbf16> to vector<1x32xf32>
    %cst = arith.constant dense<0.000000e+00> : vector<8x96xf32>
    %9 = tpu.matmul %1, %3, %cst {dimension_numbers = #tpu.dot_dimension_numbers<[1], [0], [0], [1], [0, 0, 1, 1], [], []>} : vector<8x32xbf16>, vector<32x96xbf16>, vector<8x96xf32> -> vector<8x96xf32>
    %10 = vector.broadcast %6 : vector<1x96xf32> to vector<8x96xf32>
    %11 = arith.addf %9, %10 : vector<8x96xf32>
    %12 = vector.extract_strided_slice %11 {offsets = [0, 0], sizes = [8, 8], strides = [1, 1]} : vector<8x96xf32> to vector<8x8xf32>
    %13 = arith.truncf %12 : vector<8x8xf32> to vector<8x8xbf16>
    %14 = vector.extract_strided_slice %11 {offsets = [0, 32], sizes = [8, 8], strides = [1, 1]} : vector<8x96xf32> to vector<8x8xf32>
    %15 = arith.truncf %14 : vector<8x8xf32> to vector<8x8xbf16>
    %16 = vector.extract_strided_slice %11 {offsets = [0, 64], sizes = [8, 8], strides = [1, 1]} : vector<8x96xf32> to vector<8x8xf32>
    %17 = arith.truncf %16 : vector<8x8xf32> to vector<8x8xbf16>
    %cst_4 = arith.constant dense<0.000000e+00> : vector<8x8xf32>
    %18 = tpu.matmul %13, %15, %cst_4 {dimension_numbers = #tpu.dot_dimension_numbers<[1], [1], [0], [0], [0, 0, 1, 0], [], []>} : vector<8x8xbf16>, vector<8x8xbf16>, vector<8x8xf32> -> vector<8x8xf32>
    %cst_5 = arith.constant dense<0xFF800000> : vector<8xf32>
    %19 = vector.multi_reduction <maximumf>, %18, %cst_5 [1] : vector<8x8xf32> to vector<8xf32>
    %20 = vector.shape_cast %19 : vector<8xf32> to vector<8x1xf32>
    %21 = vector.broadcast %20 : vector<8x1xf32> to vector<8x8xf32>
    %22 = arith.subf %18, %21 : vector<8x8xf32>
    %23 = math.exp %22 : vector<8x8xf32>
    %cst_6 = arith.constant dense<0.000000e+00> : vector<8xf32>
    %24 = vector.multi_reduction <add>, %23, %cst_6 [1] : vector<8x8xf32> to vector<8xf32>
    %25 = vector.shape_cast %24 : vector<8xf32> to vector<8x1xf32>
    %26 = tpu.reciprocal %25 {approx = true} : vector<8x1xf32> -> vector<8x1xf32>
    %27 = vector.broadcast %26 : vector<8x1xf32> to vector<8x8xf32>
    %28 = arith.mulf %23, %27 : vector<8x8xf32>
    %cst_7 = arith.constant dense<0.000000e+00> : vector<8xf32>
    %29 = vector.multi_reduction <add>, %28, %cst_7 [0] : vector<8x8xf32> to vector<8xf32>
    %30 = vector.shape_cast %29 : vector<8xf32> to vector<1x8xf32>
    %31 = arith.truncf %30 : vector<1x8xf32> to vector<1x8xbf16>
    %cst_8 = arith.constant dense<0.000000e+00> : vector<1x8xf32>
    %32 = tpu.matmul %31, %17, %cst_8 {dimension_numbers = #tpu.dot_dimension_numbers<[1], [0], [0], [1], [0, 0, 1, 1], [], []>} : vector<1x8xbf16>, vector<8x8xbf16>, vector<1x8xf32> -> vector<1x8xf32>
    %33 = vector.extract_strided_slice %11 {offsets = [0, 8], sizes = [8, 8], strides = [1, 1]} : vector<8x96xf32> to vector<8x8xf32>
    %34 = arith.truncf %33 : vector<8x8xf32> to vector<8x8xbf16>
    %35 = vector.extract_strided_slice %11 {offsets = [0, 40], sizes = [8, 8], strides = [1, 1]} : vector<8x96xf32> to vector<8x8xf32>
    %36 = arith.truncf %35 : vector<8x8xf32> to vector<8x8xbf16>
    %37 = vector.extract_strided_slice %11 {offsets = [0, 72], sizes = [8, 8], strides = [1, 1]} : vector<8x96xf32> to vector<8x8xf32>
    %38 = arith.truncf %37 : vector<8x8xf32> to vector<8x8xbf16>
    %cst_9 = arith.constant dense<0.000000e+00> : vector<8x8xf32>
    %39 = tpu.matmul %34, %36, %cst_9 {dimension_numbers = #tpu.dot_dimension_numbers<[1], [1], [0], [0], [0, 0, 1, 0], [], []>} : vector<8x8xbf16>, vector<8x8xbf16>, vector<8x8xf32> -> vector<8x8xf32>
    %cst_10 = arith.constant dense<0xFF800000> : vector<8xf32>
    %40 = vector.multi_reduction <maximumf>, %39, %cst_10 [1] : vector<8x8xf32> to vector<8xf32>
    %41 = vector.shape_cast %40 : vector<8xf32> to vector<8x1xf32>
    %42 = vector.broadcast %41 : vector<8x1xf32> to vector<8x8xf32>
    %43 = arith.subf %39, %42 : vector<8x8xf32>
    %44 = math.exp %43 : vector<8x8xf32>
    %cst_11 = arith.constant dense<0.000000e+00> : vector<8xf32>
    %45 = vector.multi_reduction <add>, %44, %cst_11 [1] : vector<8x8xf32> to vector<8xf32>
    %46 = vector.shape_cast %45 : vector<8xf32> to vector<8x1xf32>
    %47 = tpu.reciprocal %46 {approx = true} : vector<8x1xf32> -> vector<8x1xf32>
    %48 = vector.broadcast %47 : vector<8x1xf32> to vector<8x8xf32>
    %49 = arith.mulf %44, %48 : vector<8x8xf32>
    %cst_12 = arith.constant dense<0.000000e+00> : vector<8xf32>
    %50 = vector.multi_reduction <add>, %49, %cst_12 [0] : vector<8x8xf32> to vector<8xf32>
    %51 = vector.shape_cast %50 : vector<8xf32> to vector<1x8xf32>
    %52 = arith.truncf %51 : vector<1x8xf32> to vector<1x8xbf16>
    %cst_13 = arith.constant dense<0.000000e+00> : vector<1x8xf32>
    %53 = tpu.matmul %52, %38, %cst_13 {dimension_numbers = #tpu.dot_dimension_numbers<[1], [0], [0], [1], [0, 0, 1, 1], [], []>} : vector<1x8xbf16>, vector<8x8xbf16>, vector<1x8xf32> -> vector<1x8xf32>
    %54 = vector.extract_strided_slice %11 {offsets = [0, 16], sizes = [8, 8], strides = [1, 1]} : vector<8x96xf32> to vector<8x8xf32>
    %55 = arith.truncf %54 : vector<8x8xf32> to vector<8x8xbf16>
    %56 = vector.extract_strided_slice %11 {offsets = [0, 48], sizes = [8, 8], strides = [1, 1]} : vector<8x96xf32> to vector<8x8xf32>
    %57 = arith.truncf %56 : vector<8x8xf32> to vector<8x8xbf16>
    %58 = vector.extract_strided_slice %11 {offsets = [0, 80], sizes = [8, 8], strides = [1, 1]} : vector<8x96xf32> to vector<8x8xf32>
    %59 = arith.truncf %58 : vector<8x8xf32> to vector<8x8xbf16>
    %cst_14 = arith.constant dense<0.000000e+00> : vector<8x8xf32>
    %60 = tpu.matmul %55, %57, %cst_14 {dimension_numbers = #tpu.dot_dimension_numbers<[1], [1], [0], [0], [0, 0, 1, 0], [], []>} : vector<8x8xbf16>, vector<8x8xbf16>, vector<8x8xf32> -> vector<8x8xf32>
    %cst_15 = arith.constant dense<0xFF800000> : vector<8xf32>
    %61 = vector.multi_reduction <maximumf>, %60, %cst_15 [1] : vector<8x8xf32> to vector<8xf32>
    %62 = vector.shape_cast %61 : vector<8xf32> to vector<8x1xf32>
    %63 = vector.broadcast %62 : vector<8x1xf32> to vector<8x8xf32>
    %64 = arith.subf %60, %63 : vector<8x8xf32>
    %65 = math.exp %64 : vector<8x8xf32>
    %cst_16 = arith.constant dense<0.000000e+00> : vector<8xf32>
    %66 = vector.multi_reduction <add>, %65, %cst_16 [1] : vector<8x8xf32> to vector<8xf32>
    %67 = vector.shape_cast %66 : vector<8xf32> to vector<8x1xf32>
    %68 = tpu.reciprocal %67 {approx = true} : vector<8x1xf32> -> vector<8x1xf32>
    %69 = vector.broadcast %68 : vector<8x1xf32> to vector<8x8xf32>
    %70 = arith.mulf %65, %69 : vector<8x8xf32>
    %cst_17 = arith.constant dense<0.000000e+00> : vector<8xf32>
    %71 = vector.multi_reduction <add>, %70, %cst_17 [0] : vector<8x8xf32> to vector<8xf32>
    %72 = vector.shape_cast %71 : vector<8xf32> to vector<1x8xf32>
    %73 = arith.truncf %72 : vector<1x8xf32> to vector<1x8xbf16>
    %cst_18 = arith.constant dense<0.000000e+00> : vector<1x8xf32>
    %74 = tpu.matmul %73, %59, %cst_18 {dimension_numbers = #tpu.dot_dimension_numbers<[1], [0], [0], [1], [0, 0, 1, 1], [], []>} : vector<1x8xbf16>, vector<8x8xbf16>, vector<1x8xf32> -> vector<1x8xf32>
    %75 = vector.extract_strided_slice %11 {offsets = [0, 24], sizes = [8, 8], strides = [1, 1]} : vector<8x96xf32> to vector<8x8xf32>
    %76 = arith.truncf %75 : vector<8x8xf32> to vector<8x8xbf16>
    %77 = vector.extract_strided_slice %11 {offsets = [0, 56], sizes = [8, 8], strides = [1, 1]} : vector<8x96xf32> to vector<8x8xf32>
    %78 = arith.truncf %77 : vector<8x8xf32> to vector<8x8xbf16>
    %79 = vector.extract_strided_slice %11 {offsets = [0, 88], sizes = [8, 8], strides = [1, 1]} : vector<8x96xf32> to vector<8x8xf32>
    %80 = arith.truncf %79 : vector<8x8xf32> to vector<8x8xbf16>
    %cst_19 = arith.constant dense<0.000000e+00> : vector<8x8xf32>
    %81 = tpu.matmul %76, %78, %cst_19 {dimension_numbers = #tpu.dot_dimension_numbers<[1], [1], [0], [0], [0, 0, 1, 0], [], []>} : vector<8x8xbf16>, vector<8x8xbf16>, vector<8x8xf32> -> vector<8x8xf32>
    %cst_20 = arith.constant dense<0xFF800000> : vector<8xf32>
    %82 = vector.multi_reduction <maximumf>, %81, %cst_20 [1] : vector<8x8xf32> to vector<8xf32>
    %83 = vector.shape_cast %82 : vector<8xf32> to vector<8x1xf32>
    %84 = vector.broadcast %83 : vector<8x1xf32> to vector<8x8xf32>
    %85 = arith.subf %81, %84 : vector<8x8xf32>
    %86 = math.exp %85 : vector<8x8xf32>
    %cst_21 = arith.constant dense<0.000000e+00> : vector<8xf32>
    %87 = vector.multi_reduction <add>, %86, %cst_21 [1] : vector<8x8xf32> to vector<8xf32>
    %88 = vector.shape_cast %87 : vector<8xf32> to vector<8x1xf32>
    %89 = tpu.reciprocal %88 {approx = true} : vector<8x1xf32> -> vector<8x1xf32>
    %90 = vector.broadcast %89 : vector<8x1xf32> to vector<8x8xf32>
    %91 = arith.mulf %86, %90 : vector<8x8xf32>
    %cst_22 = arith.constant dense<0.000000e+00> : vector<8xf32>
    %92 = vector.multi_reduction <add>, %91, %cst_22 [0] : vector<8x8xf32> to vector<8xf32>
    %93 = vector.shape_cast %92 : vector<8xf32> to vector<1x8xf32>
    %94 = arith.truncf %93 : vector<1x8xf32> to vector<1x8xbf16>
    %cst_23 = arith.constant dense<0.000000e+00> : vector<1x8xf32>
    %95 = tpu.matmul %94, %80, %cst_23 {dimension_numbers = #tpu.dot_dimension_numbers<[1], [0], [0], [1], [0, 0, 1, 1], [], []>} : vector<1x8xbf16>, vector<8x8xbf16>, vector<1x8xf32> -> vector<1x8xf32>
    %96 = tpu.concatenate %32, %53, %74, %95 in 1 : vector<1x8xf32>, vector<1x8xf32>, vector<1x8xf32>, vector<1x8xf32> -> vector<1x32xf32>
    %97 = arith.truncf %96 : vector<1x32xf32> to vector<1x32xbf16>
    %cst_24 = arith.constant dense<0.000000e+00> : vector<1x32xf32>
    %98 = tpu.matmul %97, %4, %cst_24 {dimension_numbers = #tpu.dot_dimension_numbers<[1], [0], [0], [1], [0, 0, 1, 1], [], []>} : vector<1x32xbf16>, vector<32x32xbf16>, vector<1x32xf32> -> vector<1x32xf32>
    %99 = arith.addf %98, %8 : vector<1x32xf32>
    %c0_25 = arith.constant 0 : index
    %c0_26 = arith.constant 0 : index
    %c0_27 = arith.constant 0 : index
    %100 = vector.load %arg3[%c0_25, %c0_26, %c0_27] : memref<1x1x32xf32, #tpu.memory_space<vmem>>, vector<1x1x32xf32>
    %101 = vector.shape_cast %100 : vector<1x1x32xf32> to vector<1x32xf32>
    %102 = vector.shape_cast %99 : vector<1x32xf32> to vector<1x1x32xf32>
    tpu.vector_store %arg3[%c0_25, %c0_26, %c0_27], %102 {strides = array<i32>} : memref<1x1x32xf32, #tpu.memory_space<vmem>>, vector<1x1x32xf32>,
    return
  }
  func.func @transform_0(%arg0: i32) -> (i32, i32, i32) {
    %c0_i32 = arith.constant 0 : i32
    %c0_i32_0 = arith.constant 0 : i32
    %c0_i32_1 = arith.constant 0 : i32
    return %arg0, %c0_i32, %c0_i32_0 : i32, i32, i32
  }
  func.func @transform_1(%arg0: i32) -> (i32, i32) {
    %c0_i32 = arith.constant 0 : i32
    %c0_i32_0 = arith.constant 0 : i32
    %c0_i32_1 = arith.constant 0 : i32
    return %c0_i32, %c0_i32_0 : i32, i32
  }
  func.func @transform_2(%arg0: i32) -> (i32, i32, i32) {
    %c0_i32 = arith.constant 0 : i32
    %c0_i32_0 = arith.constant 0 : i32
    %c0_i32_1 = arith.constant 0 : i32
    return %arg0, %c0_i32, %c0_i32_0 : i32, i32, i32
  }
}

</mosaic_0001>

<bundles_post_ra>
// kernel: mha_interact.1
= control target key start
LH: loop header
LB: loop body
LE: loop exit
PB: predicated region body
PF: predicated region fallthrough
CT: control target
= control target key end

     0   :  { %s627_s9 = smov 0   ;;  %s720_s0 = inlined_call_operand.vmem [shape: bf16[2,8,32], index: 0, kind: input, shape index: {}]   ;;  %s721_s1 = inlined_call_operand.vmem [shape: bf16[33,128], index: 1, kind: input, shape index: {}]   ;;  %s722_s2 = inlined_call_operand.vmem [shape: f32[2,1,32], index: 2, kind: output, shape index: {}]  }
   0x1 LB: > { %s522_s10 = sadd.s32 4294967295, %s595_s9   ;;  %p526_p0 = scmp.ge.s32.totalorder %s595_s9, 1  ;;  %s595_s9 = sphi %s627_s9, %s12_s9  }
   0x2   : > { %p111_p1 = scmp.lt.s32.totalorder %s595_s9, 3 }
   0x4   : > { %p112_p2 = pnand %p526_p0, %p111_p1 }
   0x5   : > { %p130_p3 = scmp.lt.s32.totalorder (!%p112_p2), %s522_s10, 1  ;;  %s597_s21 = smov (!%p112_p2), 104  }
   0x6   : > { %115 = sbr.rel (%p112_p2) target bundleno = 1069 (0x42d), region = 28  ;;  %s598_s22 = smov (!%p112_p2), 120  }
   0x7   : > { %s599_s23 = smov (!%p112_p2), 96   ;;  %s600_s24 = smov (!%p112_p2), 80  }
   0x8   : > { %s601_s25 = smov (!%p112_p2), 72   ;;  %s602_s26 = smov (!%p112_p2), 88  }
   0x9   : > { %s603_s27 = smov (!%p112_p2), 112   ;;  %s604_s28 = smov (!%p112_p2), 64  }
   0xa   : > { %s605_s29 = smov (!%p112_p2), 48   ;;  %s606_s30 = smov (!%p112_p2), 56  }
   0xb   : > { %v638_v0 = vld [vmem:[%s721_s1 + $0x8] sm:$0xff]  ;;  %v644_v1 = vld [vmem:[%s721_s1] sm:$0xff]  ;;  %s724_s10 = smov (!%p130_p3, %s522_s10), 1  ;;  %vm158_vm0 = vcmask 261120   ;;  %v657_v3 = vld [vmem:[%s721_s1 + $0x10] sm:$0x1] }
   0xc   : > { %168 = vmatpush.bf16.msra.mxu0 %v638_v0  ;;  %s527_s15 = sshll.u32 %s724_s10, 2  ;;  %v144_v4 = vunpack.c.l.bf16 %v657_v3  ;;  %vm179_vm1 = vcmask 64512   ;;  %vm223_vm2 = vcmask 1043456   ;;  %s607_s3 = smov 40   ;;  %vm442_vm3 = vcmask 130048  }
   0xd   : > { %s133_s18 = scalar_lea.vmem %s720_s0, %s527_s15  ;;  %s608_s4 = smov 32   ;;  %vm444_vm4 = vcmask 195584   ;;  %vm473_vm5 = vcmask 253952  }
   0xe   : > { %v138_v2 = vld [vmem:[%s133_s18] sm:$0xf]  ;;  %v145_v5 = vperm.slane %v144_v4, 0  ;;  %s609_s5 = smov 8   ;;  %s610_s6 = smov 16  }
   0xf   : > { %s611_s7 = smov 24   ;;  %s136_s12 = scalar_lea.vmem %s722_s2, %s724_s10 }
  0x10   : > { %169 = vmatpush.bf16.msra.mxu0 %v644_v1 }
  0x13   : > { %536 = vmatmul.msk.bf16.vlgmr.msra.gmra.mxu0 %vm158_vm0, %v138_v2 }
  0x90   : > { %v171_v6 = vpop.f32.mrf.mxu0 }
  0x91   : > { %v172_v7 = vadd.f32 %v171_v6, %v145_v5 }
  0x93   : > { %v662_v8 = vpack.c.bf16 %v172_v7, %v172_v7 }
  0x95   : > { %366 = vrot.lane.b32.xlu2 %v662_v8, %s597_s21  ;;  %240 = vrot.lane.b32.xlu1 %v662_v8, %s598_s22 }
  0x96   : > { %177 = vrot.lane.b32.xlu0 %v662_v8, %s599_s23 }
  0x98   : > { %v173_v9 = vpop.f32.mrf.mxu0 }
  0x9d   : > { %305 = vrot.lane.b32.xlu2 %v662_v8, %s600_s24  ;;  %368 = vrot.lane.b32.xlu1 %v662_v8, %s601_s25 }
  0x9e   : > { %242 = vrot.lane.b32.xlu0 %v662_v8, %s602_s26 }
  0xa6   : > { %303 = vrot.lane.b32.xlu0 %v662_v8, %s603_s27 }
  0xef   : > { %v367_v10 = vpop.permute.xlu2 %366 }
  0xf7   : > { %v306_v11 = vpop.permute.xlu2 %305 }
  0xf8   : > { %v311_v12 = vsel %vm179_vm1, %v306_v11, 0 }
  0xf9   : > { %320 = vmatpush.bf16.xpose.msrb.mxu0 %v311_v12 }
 0x107   : > { %v241_v13 = vpop.permute.xlu1 %240 }
 0x108   : > { %v178_v14 = vpop.permute.xlu0 %177 }
 0x109   : > { %v184_v15 = vsel %vm179_vm1, %v178_v14, 0 }
 0x10a   : > { %193 = vmatpush.bf16.xpose.msra.mxu1 %v184_v15 }
 0x10f   : > { %v369_v16 = vpop.permute.xlu1 %368 }
 0x110   : > { %v243_v17 = vpop.permute.xlu0 %242  ;;  %v374_v18 = vsel %vm179_vm1, %v369_v16, 0 }
 0x111   : > { %537 = vmatmul.msk.bf16.vlgmr.msra.gmra.mxu1 %vm179_vm1, %v662_v8  ;;  %v248_v19 = vsel %vm179_vm1, %v243_v17, 0 }
 0x112   : > { %257 = vmatpush.bf16.xpose.msra.mxu3 %v248_v19 }
 0x118   : > { %v304_v20 = vpop.permute.xlu0 %303 }
 0x119   : > { %539 = vmatmul.msk.bf16.vlgmr.msra.gmra.mxu3 %vm179_vm1, %v241_v13  ;;  %541 = vmatmul.msk.bf16.vlgmr.msrb.gmra.mxu0 %vm179_vm1, %v304_v20 }
 0x11a   : > { %383 = vmatpush.bf16.xpose.msrb.mxu3 %v374_v18 }
 0x129   : > { %543 = vmatmul.msk.bf16.vlgmr.msrb.gmra.mxu3 %vm179_vm1, %v367_v10 }
 0x18e   : > { %v195_v21 = vpop.f32.mrf.mxu1 }
 0x18f   : > { %v199_v22 = vsel %vm179_vm1, %v195_v21, -inf }
 0x190   : > { %200 = vmax.xlane.f32.xlu1 %v199_v22 }
 0x196   : > { %v197_v23 = vpop.f32.mrf.mxu1  ;;  %v322_v24 = vpop.f32.mrf.mxu0 }
 0x197   : > { %v326_v29 = vsel %vm179_vm1, %v322_v24, -inf }
 0x19c   : > { %v259_v25 = vpop.f32.mrf.mxu3 }
 0x19d   : > { %v263_v26 = vsel %vm179_vm1, %v259_v25, -inf }
 0x19e   : > { %264 = vmax.xlane.f32.xlu2 %v263_v26  ;;  %v324_v27 = vpop.f32.mrf.mxu0 }
 0x1a4   : > { %v261_v28 = vpop.f32.mrf.mxu3 }
 0x1a6   : > { %327 = vmax.xlane.f32.xlu2 %v326_v29 }
 0x1ac   : > { %v385_v30 = vpop.f32.mrf.mxu3 }
 0x1ad   : > { %v389_v31 = vsel %vm179_vm1, %v385_v30, -inf }
 0x1ae   : > { %390 = vmax.xlane.f32.xlu0 %v389_v31 }
 0x1b4   : > { %v387_v32 = vpop.f32.mrf.mxu3 }
 0x1c2   : > { %218 = vrot.lane.b32.xlu0 %v662_v8, %s604_s28 }
 0x1ca   : > { %345 = vrot.lane.b32.xlu0 %v662_v8, %s605_s29 }
 0x1d2   : > { %449 = vrot.lane.b32.xlu0 %v638_v0, %s608_s4 }
 0x203   : > { %v201_v33 = vpop.xlane.xlu1 %200 }
 0x204   : > { %v202_v34 = vsub.f32 %v195_v21, %v201_v33 }
 0x206   : > { %v203_v35 = vmul.f32 1.442695, %v202_v34 }
 0x208   : > { %573 = vpow2.f32 %v203_v35 }
 0x20e   : > { %v574_v36 = vpop.eup %573 }
 0x20f   : > { %v205_v37 = vsel %vm179_vm1, %v574_v36, 0.0 }
 0x210   : > { %206 = vadd.xlane.f32.xlu1 %v205_v37 }
 0x211   : > { %v265_v38 = vpop.xlane.xlu2 %264 }
 0x212   : > { %v266_v39 = vsub.f32 %v259_v25, %v265_v38 }
 0x214   : > { %v267_v40 = vmul.f32 1.442695, %v266_v39 }
 0x216   : > { %575 = vpow2.f32 %v267_v40 }
 0x219   : > { %v328_v41 = vpop.xlane.xlu2 %327 }
 0x21a   : > { %v329_v42 = vsub.f32 %v322_v24, %v328_v41 }
 0x21c   : > { %v576_v43 = vpop.eup %575  ;;  %v330_v44 = vmul.f32 1.442695, %v329_v42 }
 0x21d   : > { %v269_v45 = vsel %vm179_vm1, %v576_v43, 0.0 }
 0x21e   : > { %577 = vpow2.f32 %v330_v44  ;;  %270 = vadd.xlane.f32.xlu2 %v269_v45 }
 0x221   : > { %v391_v46 = vpop.xlane.xlu0 %390 }
 0x222   : > { %v392_v47 = vsub.f32 %v385_v30, %v391_v46 }
 0x224   : > { %v578_v48 = vpop.eup %577  ;;  %v393_v49 = vmul.f32 1.442695, %v392_v47 }
 0x225   : > { %v332_v50 = vsel %vm179_vm1, %v578_v48, 0.0 }
 0x226   : > { %579 = vpow2.f32 %v393_v49  ;;  %333 = vadd.xlane.f32.xlu1 %v332_v50 }
 0x22c   : > { %v580_v51 = vpop.eup %579 }
 0x22d   : > { %v395_v52 = vsel %vm179_vm1, %v580_v51, 0.0 }
 0x22e   : > { %396 = vadd.xlane.f32.xlu1 %v395_v52 }
 0x234   : > { %v219_v53 = vpop.permute.xlu0 %218 }
 0x235   : > { %v225_v54 = vsel %vm223_vm2, %v219_v53, 0 }
 0x236   : > { %282 = vrot.lane.b32.xlu2 %v662_v8, %s606_s30  ;;  %234 = vmatpush.bf16.msra.mxu2 %v225_v54 }
 0x23c   : > { %v346_v55 = vpop.permute.xlu0 %345 }
 0x23d   : > { %v351_v56 = vsel %vm223_vm2, %v346_v55, 0 }
 0x23e   : > { %360 = vmatpush.bf16.msrb.mxu1 %v351_v56 }
 0x247   : > { %408 = vrot.lane.b32.xlu1 %v662_v8, %s607_s3 }
 0x24f   : > { %447 = vrot.lane.b32.xlu1 %v644_v1, %s608_s4 }
 0x283   : > { %v207_v57 = vpop.xlane.xlu1 %206 }
 0x284   : > { %581 = vrcp.f32 %v207_v57 }
 0x28a   : > { %v582_v58 = vpop.eup %581 }
 0x28b   : > { %v209_v59 = vmul.f32 %v582_v58, %v574_v36 }
 0x28d   : > { %v210_v60 = vsel %vm179_vm1, %v209_v59, 0.0 }
 0x28e   : > { %v211_v61 = vrot.slane %v210_v60, 4 }
 0x290   : > { %v212_v62 = vadd.f32 %v211_v61, %v210_v60 }
 0x291   : > { %v271_v63 = vpop.xlane.xlu2 %270 }
 0x292   : > { %583 = vrcp.f32 %v271_v63  ;;  %v213_v2 = vrot.slane %v212_v62, 2 }
 0x294   : > { %v214_v5 = vadd.f32 %v213_v2, %v212_v62 }
 0x296   : > { %v215_v6 = vrot.slane %v214_v5, 1 }
 0x298   : > { %v584_v7 = vpop.eup %583  ;;  %v216_v9 = vadd.f32 %v215_v6, %v214_v5 }
 0x299   : > { %v273_v10 = vmul.f32 %v584_v7, %v576_v43  ;;  %v334_v11 = vpop.xlane.xlu1 %333  ;;  %v283_v12 = vpop.permute.xlu2 %282 }
 0x29a   : > { %585 = vrcp.f32 %v334_v11  ;;  %v288_v8 = vsel %vm223_vm2, %v283_v12, 0  ;;  %v217_v13 = vpack.c.bf16 %v216_v9, %v216_v9 }
 0x29b   : > { %v274_v14 = vsel %vm179_vm1, %v273_v10, 0.0  ;;  %297 = vmatpush.bf16.msrb.mxu2 %v288_v8 }
 0x29c   : > { %v275_v15 = vrot.slane %v274_v14, 4  ;;  %538 = vmatmul.msk.bf16.vlgmr.msra.gmra.mxu2 %vm179_vm1, %v217_v13 }
 0x29e   : > { %v276_v16 = vadd.f32 %v275_v15, %v274_v14 }
 0x2a0   : > { %v586_v17 = vpop.eup %585  ;;  %v277_v18 = vrot.slane %v276_v16, 2 }
 0x2a1   : > { %v336_v19 = vmul.f32 %v586_v17, %v578_v48  ;;  %v397_v20 = vpop.xlane.xlu1 %396 }
 0x2a2   : > { %587 = vrcp.f32 %v397_v20  ;;  %v278_v21 = vadd.f32 %v277_v18, %v276_v16 }
 0x2a3   : > { %v337_v22 = vsel %vm179_vm1, %v336_v19, 0.0 }
 0x2a4   : > { %v338_v23 = vrot.slane %v337_v22, 4  ;;  %v279_v24 = vrot.slane %v278_v21, 1 }
 0x2a6   : > { %v339_v25 = vadd.f32 %v338_v23, %v337_v22  ;;  %v280_v26 = vadd.f32 %v279_v24, %v278_v21 }
 0x2a8   : > { %v588_v27 = vpop.eup %587  ;;  %v340_v28 = vrot.slane %v339_v25, 2  ;;  %v281_v30 = vpack.c.bf16 %v280_v26, %v280_v26 }
 0x2a9   : > { %v399_v29 = vmul.f32 %v588_v27, %v580_v51  ;;  %v450_v51 = vpop.permute.xlu0 %449 }
 0x2aa   : > { %v341_v31 = vadd.f32 %v340_v28, %v339_v25  ;;  %466 = vmatpush.bf16.msra.mxu0 %v450_v51 }
 0x2ab   : > { %v400_v32 = vsel %vm179_vm1, %v399_v29, 0.0 }
 0x2ac   : > { %v401_v33 = vrot.slane %v400_v32, 4  ;;  %540 = vmatmul.msk.bf16.vlgmr.msrb.gmra.mxu2 %vm179_vm1, %v281_v30  ;;  %v342_v34 = vrot.slane %v341_v31, 1 }
 0x2ae   : > { %v402_v35 = vadd.f32 %v401_v33, %v400_v32  ;;  %v343_v36 = vadd.f32 %v342_v34, %v341_v31 }
 0x2b0   : > { %v403_v37 = vrot.slane %v402_v35, 2  ;;  %v344_v38 = vpack.c.bf16 %v343_v36, %v343_v36 }
 0x2b2   : > { %v404_v39 = vadd.f32 %v403_v37, %v402_v35  ;;  %542 = vmatmul.msk.bf16.vlgmr.msrb.gmra.mxu1 %vm179_vm1, %v344_v38 }
 0x2b4   : > { %v405_v0 = vrot.slane %v404_v39, 1 }
 0x2b6   : > { %v406_v40 = vadd.f32 %v405_v0, %v404_v39 }
 0x2b8   : > { %v407_v42 = vpack.c.bf16 %v406_v40, %v406_v40 }
 0x2b9   : > { %v409_v41 = vpop.permute.xlu1 %408 }
 0x2ba   : > { %v414_v1 = vsel %vm223_vm2, %v409_v41, 0 }
 0x2bb   : > { %423 = vmatpush.bf16.msra.mxu2 %v414_v1 }
 0x2be   : > { %544 = vmatmul.msk.bf16.vlgmr.msra.gmra.mxu2 %vm179_vm1, %v407_v42 }
 0x2c1   : > { %v448_v52 = vpop.permute.xlu1 %447 }
 0x2c2   : > { %467 = vmatpush.bf16.msra.mxu0 %v448_v52 }
 0x31f   : > { %v236_v43 = vpop.f32.mrf.mxu2 }
 0x327   : > { %v238_v44 = vpop.f32.mrf.mxu2 }
 0x32f   : > { %v299_v45 = vpop.f32.mrf.mxu2  ;;  %v362_v46 = vpop.f32.mrf.mxu1 }
 0x330   : > { %430 = vrot.lane.b32.xlu2 %v299_v45, %s609_s5  ;;  %434 = vrot.lane.b32.xlu0 %v362_v46, %s610_s6 }
 0x337   : > { %v301_v47 = vpop.f32.mrf.mxu2  ;;  %v364_v48 = vpop.f32.mrf.mxu1 }
 0x338   : > { %454 = vrot.lane.b32.xlu0 %v144_v4, %s608_s4 }
 0x341   : > { %v425_v49 = vpop.f32.mrf.mxu2 }
 0x342   : > { %438 = vrot.lane.b32.xlu2 %v425_v49, %s611_s7 }
 0x349   : > { %v427_v50 = vpop.f32.mrf.mxu2 }
 0x38a   : > { %v431_v53 = vpop.permute.xlu2 %430 }
 0x38b   : > { %v441_v54 = vsel %vm179_vm1, %v236_v43, %v431_v53 }
 0x39c   : > { %v439_v56 = vpop.permute.xlu2 %438 }
 0x3a2   : > { %v435_v55 = vpop.permute.xlu0 %434 }
 0x3a3   : > { %v443_v57 = vsel %vm442_vm3, %v441_v54, %v435_v55 }
 0x3a4   : > { %v445_v58 = vsel %vm444_vm4, %v443_v57, %v439_v56 }
 0x3a5   : > { %v446_v3 = vpack.c.bf16 %v445_v58, %v445_v58 }
 0x3a7   : > { %545 = vmatmul.msk.bf16.vlgmr.msra.gmra.mxu0 %vm158_vm0, %v446_v3 }
 0x3aa   : > { %v455_v4 = vpop.permute.xlu0 %454 }
 0x424   : > { %v469_v59 = vpop.f32.mrf.mxu0 }
 0x425   : > { %v470_v60 = vadd.f32 %v469_v59, %v455_v4 }
 0x427   : > { %474 = vst.msk [vmem:[%s136_s12] sm:$0x1] %vm473_vm5, %v470_v60 }
 0x42c   : > { %v471_v61 = vpop.f32.mrf.mxu0 }
 0x42d PF: > { %s12_s9 = sadd.s32 1, %s595_s9  }
 0x42e   : > { %p9_p4 = scmp.ge.s32.totalorder %s12_s9, 4  }
 0x430   :  { %11 = sbr.rel (!%p9_p4) target bundleno = 1 (0x1), region = 58 }

</bundles_post_ra>
